<compile_context>
chip_gen: v5e
topology: v5e:2x2
jax: 0.10.0
libtpu: 0.0.40
codegen_flags: <defaults>
</compile_context>

<pallas_src>
import functools

import jax
import jax.numpy as jnp
from jax import lax
from jax.experimental import pallas as pl
from jax.experimental.pallas import tpu as pltpu

BN_EPS = 1e-5
LANE = 128          # lane width: pad K and Cout to multiples of this
TM_DEFAULT = 256    # rows of the GEMM processed per grid step
VMEM_LIMIT = 32 * 1024 * 1024


def _round_up(x, m):
    return (x + m - 1) // m * m


# --------------------------------------------------------------------------
# Pass A: tiled GEMM (im2col conv) + per-channel sum / sum-of-squares
# --------------------------------------------------------------------------
def _gemm_stats_kernel(p_ref, w_ref, y_ref, sum_ref, ssq_ref):
    """p_ref: (TM, Kp) bf16, w_ref: (Kp, Cp) bf16, y_ref: (TM, Cp) f32,
    sum_ref/ssq_ref: (1, Cp) f32 resident accumulators."""
    y = jnp.dot(p_ref[...], w_ref[...], preferred_element_type=jnp.float32)
    y_ref[...] = y

    @pl.when(pl.program_id(0) == 0)
    def _init():
        sum_ref[...] = jnp.zeros_like(sum_ref)
        ssq_ref[...] = jnp.zeros_like(ssq_ref)

    # Running sum / sum-of-squares ride on VPU/XLU slack while MXU is busy.
    sum_ref[...] += jnp.sum(y, axis=0, keepdims=True)
    ssq_ref[...] += jnp.sum(y * y, axis=0, keepdims=True)


def _gemm_with_stats(patches, w_mat, tm):
    mp, kp = patches.shape
    cp = w_mat.shape[1]
    grid = (mp // tm,)
    return pl.pallas_call(
        _gemm_stats_kernel,
        out_shape=(
            jax.ShapeDtypeStruct((mp, cp), jnp.float32),
            jax.ShapeDtypeStruct((1, cp), jnp.float32),
            jax.ShapeDtypeStruct((1, cp), jnp.float32),
        ),
        grid=grid,
        in_specs=[
            # Large streaming operand; default double-buffering suffices here
            # (raise with pipeline_mode=pl.Buffered(3) if DMA shows exposed).
            pl.BlockSpec((tm, kp), lambda i: (i, 0)),
            pl.BlockSpec((kp, cp), lambda i: (0, 0)),
        ],
        out_specs=[
            pl.BlockSpec((tm, cp), lambda i: (i, 0)),
            pl.BlockSpec((1, cp), lambda i: (0, 0)),   # resident accumulator
            pl.BlockSpec((1, cp), lambda i: (0, 0)),   # resident accumulator
        ],
        compiler_params=pltpu.CompilerParams(
            # "arbitrary": stats accumulation must be sequential over M tiles.
            dimension_semantics=("arbitrary",),
            vmem_limit_bytes=VMEM_LIMIT,
        ),
    )(patches, w_mat)


# --------------------------------------------------------------------------
# Pass B: tiled BatchNorm (from accumulated stats) + ReLU
# --------------------------------------------------------------------------
def _bn_relu_kernel(y_ref, sum_ref, ssq_ref, g_ref, b_ref, o_ref, *, inv_m):
    mean = sum_ref[...] * inv_m
    var = jnp.maximum(ssq_ref[...] * inv_m - mean * mean, 0.0)
    scale = g_ref[...] * lax.rsqrt(var + BN_EPS)
    shift = b_ref[...] - mean * scale
    o_ref[...] = jnp.maximum(y_ref[...] * scale + shift, 0.0).astype(o_ref.dtype)


def _bn_relu(y, s, ss, gamma_p, beta_p, m_real, tm, out_dtype):
    mp, cp = y.shape
    grid = (mp // tm,)
    return pl.pallas_call(
        functools.partial(_bn_relu_kernel, inv_m=1.0 / float(m_real)),
        out_shape=jax.ShapeDtypeStruct((mp, cp), out_dtype),
        grid=grid,
        in_specs=[
            pl.BlockSpec((tm, cp), lambda i: (i, 0)),
            pl.BlockSpec((1, cp), lambda i: (0, 0)),
            pl.BlockSpec((1, cp), lambda i: (0, 0)),
            pl.BlockSpec((1, cp), lambda i: (0, 0)),
            pl.BlockSpec((1, cp), lambda i: (0, 0)),
        ],
        out_specs=pl.BlockSpec((tm, cp), lambda i: (i, 0)),
        compiler_params=pltpu.CompilerParams(
            dimension_semantics=("parallel",),   # independent tiles -> megacore
            vmem_limit_bytes=VMEM_LIMIT,
        ),
    )(y, s, ss, gamma_p, beta_p)


# --------------------------------------------------------------------------
# JAX-side glue: im2col, padding, weight reshaping
# --------------------------------------------------------------------------
def _im2col_3x3(x_nhwc):
    """3x3, stride 1, pad 1 im2col.  (N,H,W,C) -> (N*H*W, 9*C)."""
    N, H, W, C = x_nhwc.shape
    xp = jnp.pad(x_nhwc, ((0, 0), (1, 1), (1, 1), (0, 0)))
    cols = [xp[:, dh:dh + H, dw:dw + W, :] for dh in range(3) for dw in range(3)]
    return jnp.concatenate(cols, axis=-1).reshape(N * H * W, 9 * C)


def _to_gemm_weight(w_oihw, k_pad, c_pad):
    """(Cout, Cin, 3, 3) -> zero-padded (Kp, Cp) bf16 matching im2col order."""
    cout = w_oihw.shape[0]
    wm = jnp.transpose(w_oihw, (2, 3, 1, 0)).reshape(-1, cout)
    k = wm.shape[0]
    wm = jnp.pad(wm, ((0, k_pad - k), (0, c_pad - cout)))
    return wm.astype(jnp.bfloat16)


def _conv_bn_relu(x_nhwc, w_oihw, gamma, beta, out_dtype):
    """One Conv3x3(bias=False) -> BatchNorm2d(train stats) -> ReLU layer."""
    N, H, W, Cin = x_nhwc.shape
    Cout = w_oihw.shape[0]
    M = N * H * W
    K = 9 * Cin
    Kp = _round_up(K, LANE)
    Cp = _round_up(Cout, LANE)
    tm = min(TM_DEFAULT, _round_up(M, 8))
    Mp = _round_up(M, tm)

    patches = _im2col_3x3(x_nhwc)                               # (M, K)
    patches = jnp.pad(patches, ((0, Mp - M), (0, Kp - K)))      # zero rows/cols
    patches = patches.astype(jnp.bfloat16)

    w_mat = _to_gemm_weight(w_oihw, Kp, Cp)                     # (Kp, Cp) bf16
    g = jnp.pad(gamma.astype(jnp.float32), (0, Cp - Cout))[None, :]
    b = jnp.pad(beta.astype(jnp.float32), (0, Cp - Cout))[None, :]

    y, s, ss = _gemm_with_stats(patches, w_mat, tm)             # pass A
    out = _bn_relu(y, s, ss, g, b, M, tm, out_dtype)            # pass B
    return out[:M, :Cout].reshape(N, H, W, Cout)


def double_conv(x_nchw, w1, g1, b1, w2, g2, b2):
    """Forward pass of DoubleConv. Input/output in NCHW, matching PyTorch."""
    x = jnp.transpose(x_nchw, (0, 2, 3, 1)).astype(jnp.float32)  # -> NHWC
    # Intermediate activation in bf16: it would be cast to bf16 for the second
    # GEMM anyway, and this halves HBM traffic for y1 and its patch slab.
    y1 = _conv_bn_relu(x, w1, g1, b1, out_dtype=jnp.bfloat16)
    y2 = _conv_bn_relu(y1, w2, g2, b2, out_dtype=jnp.float32)
    return jnp.transpose(y2, (0, 3, 1, 2))                       # -> NCHW


# --------------------------------------------------------------------------
# Reference & test
# --------------------------------------------------------------------------
def _ref_double_conv(x, w1, g1, b1, w2, g2, b2):
    """Pure-JAX reference mirroring PyTorch training-mode forward; conv inputs
    rounded to bf16 (f32 accumulation) to match the kernel's MXU precision."""
    def r(v):
        return v.astype(jnp.bfloat16).astype(jnp.float32)

    def conv(x, w):
        return lax.conv_general_dilated(
            r(x), r(w), window_strides=(1, 1), padding=((1, 1), (1, 1)),
            dimension_numbers=("NCHW", "OIHW", "NCHW"))

    def bn_relu(y, g, b):
        mean = jnp.mean(y, axis=(0, 2, 3), keepdims=True)
        var = jnp.mean((y - mean) ** 2, axis=(0, 2, 3), keepdims=True)
        yh = (y - mean) * lax.rsqrt(var + BN_EPS)
        return jnp.maximum(yh * g[None, :, None, None] + b[None, :, None, None], 0.0)

    y = bn_relu(conv(x, w1), g1, b1)
    return bn_relu(conv(y, w2), g2, b2)


if __name__ == "__main__":
    N, Cin, Cout, H, W = 2, 4, 8, 16, 16

    key = jax.random.PRNGKey(0)
    kx, kw1, kw2, kg1, kb1, kg2, kb2 = jax.random.split(key, 7)

    x = jax.random.normal(kx, (N, Cin, H, W), dtype=jnp.float32)
    # Conv weights: (Cout, Cin, 3, 3), bias=False as in the module.
    w1 = jax.random.normal(kw1, (Cout, Cin, 3, 3), dtype=jnp.float32) * 0.1
    w2 = jax.random.normal(kw2, (Cout, Cout, 3, 3), dtype=jnp.float32) * 0.1
    # BatchNorm affine params (deterministic, non-trivial).
    g1 = 1.0 + 0.1 * jax.random.normal(kg1, (Cout,), dtype=jnp.float32)
    b1 = 0.1 * jax.random.normal(kb1, (Cout,), dtype=jnp.float32)
    g2 = 1.0 + 0.1 * jax.random.normal(kg2, (Cout,), dtype=jnp.float32)
    b2 = 0.1 * jax.random.normal(kb2, (Cout,), dtype=jnp.float32)

    out = jax.jit(double_conv)(x, w1, g1, b1, w2, g2, b2)
    out = jax.block_until_ready(out)

    ref = _ref_double_conv(x, w1, g1, b1, w2, g2, b2)
    assert out.shape == (N, Cout, H, W)
    assert jnp.allclose(out, ref, atol=5e-3, rtol=5e-3), (
        f"max abs diff {jnp.max(jnp.abs(out - ref))}")

    print("KERNEL_OK")
</pallas_src>

<mosaic_0001>
module attributes {stable_mosaic.version = 11 : i64} {
  func.func @_bn_relu_kernel(%arg0: i32, %arg1: memref<256x128xf32, #tpu.memory_space<vmem>>, %arg2: memref<1x128xf32, #tpu.memory_space<vmem>>, %arg3: memref<1x128xf32, #tpu.memory_space<vmem>>, %arg4: memref<1x128xf32, #tpu.memory_space<vmem>>, %arg5: memref<1x128xf32, #tpu.memory_space<vmem>>, %arg6: memref<256x128xbf16, #tpu.memory_space<vmem>>) attributes {dimension_semantics = [#tpu.dimension_semantics<parallel>], iteration_bounds = array<i64: 2>, scalar_prefetch = 0 : i64, scratch_operands = 0 : i64, tpu.core_type = #tpu.core_type<tc>, window_params = [{transform_indices = @transform_0, window_bounds = array<i64: 256, 128>}, {pipeline_mode = #tpu.pipeline_mode<synchronous>, transform_indices = @transform_1, window_bounds = array<i64: 1, 128>}, {pipeline_mode = #tpu.pipeline_mode<synchronous>, transform_indices = @transform_2, window_bounds = array<i64: 1, 128>}, {pipeline_mode = #tpu.pipeline_mode<synchronous>, transform_indices = @transform_3, window_bounds = array<i64: 1, 128>}, {pipeline_mode = #tpu.pipeline_mode<synchronous>, transform_indices = @transform_4, window_bounds = array<i64: 1, 128>}, {transform_indices = @transform_5, window_bounds = array<i64: 256, 128>}]} {
    %c0 = arith.constant 0 : index
    %c0_0 = arith.constant 0 : index
    %0 = vector.load %arg2[%c0, %c0_0] : memref<1x128xf32, #tpu.memory_space<vmem>>, vector<1x128xf32>
    %cst = arith.constant 0.001953125 : f32
    %1 = vector.broadcast %cst : f32 to vector<1x128xf32>
    %2 = arith.mulf %0, %1 : vector<1x128xf32>
    %c0_1 = arith.constant 0 : index
    %c0_2 = arith.constant 0 : index
    %3 = vector.load %arg3[%c0_1, %c0_2] : memref<1x128xf32, #tpu.memory_space<vmem>>, vector<1x128xf32>
    %cst_3 = arith.constant 0.001953125 : f32
    %4 = vector.broadcast %cst_3 : f32 to vector<1x128xf32>
    %5 = arith.mulf %3, %4 : vector<1x128xf32>
    %6 = arith.mulf %2, %2 : vector<1x128xf32>
    %7 = arith.subf %5, %6 : vector<1x128xf32>
    %cst_4 = arith.constant 0.000000e+00 : f32
    %8 = vector.broadcast %cst_4 : f32 to vector<1x128xf32>
    %9 = arith.maximumf %7, %8 : vector<1x128xf32>
    %c0_5 = arith.constant 0 : index
    %c0_6 = arith.constant 0 : index
    %10 = vector.load %arg4[%c0_5, %c0_6] : memref<1x128xf32, #tpu.memory_space<vmem>>, vector<1x128xf32>
    %cst_7 = arith.constant 9.99999974E-6 : f32
    %11 = vector.broadcast %cst_7 : f32 to vector<1x128xf32>
    %12 = arith.addf %9, %11 : vector<1x128xf32>
    %13 = math.rsqrt %12 : vector<1x128xf32>
    %14 = arith.mulf %10, %13 : vector<1x128xf32>
    %c0_8 = arith.constant 0 : index
    %c0_9 = arith.constant 0 : index
    %15 = vector.load %arg5[%c0_8, %c0_9] : memref<1x128xf32, #tpu.memory_space<vmem>>, vector<1x128xf32>
    %16 = arith.mulf %2, %14 : vector<1x128xf32>
    %17 = arith.subf %15, %16 : vector<1x128xf32>
    %c0_10 = arith.constant 0 : index
    %c0_11 = arith.constant 0 : index
    %18 = vector.load %arg1[%c0_10, %c0_11] : memref<256x128xf32, #tpu.memory_space<vmem>>, vector<256x128xf32>
    %19 = vector.broadcast %14 : vector<1x128xf32> to vector<256x128xf32>
    %20 = arith.mulf %18, %19 : vector<256x128xf32>
    %21 = vector.broadcast %17 : vector<1x128xf32> to vector<256x128xf32>
    %22 = arith.addf %20, %21 : vector<256x128xf32>
    %cst_12 = arith.constant 0.000000e+00 : f32
    %23 = vector.broadcast %cst_12 : f32 to vector<256x128xf32>
    %24 = arith.maximumf %22, %23 : vector<256x128xf32>
    %25 = arith.truncf %24 : vector<256x128xf32> to vector<256x128xbf16>
    %c0_13 = arith.constant 0 : index
    %c0_14 = arith.constant 0 : index
    %26 = vector.load %arg6[%c0_13, %c0_14] : memref<256x128xbf16, #tpu.memory_space<vmem>>, vector<256x128xbf16>
    tpu.vector_store %arg6[%c0_13, %c0_14], %25 {strides = array<i32>} : memref<256x128xbf16, #tpu.memory_space<vmem>>, vector<256x128xbf16>,
    return
  }
  func.func @transform_0(%arg0: i32) -> (i32, i32) {
    %c0_i32 = arith.constant 0 : i32
    %c0_i32_0 = arith.constant 0 : i32
    return %arg0, %c0_i32 : i32, i32
  }
  func.func @transform_1(%arg0: i32) -> (i32, i32) {
    %c0_i32 = arith.constant 0 : i32
    %c0_i32_0 = arith.constant 0 : i32
    %c0_i32_1 = arith.constant 0 : i32
    return %c0_i32, %c0_i32_0 : i32, i32
  }
  func.func @transform_2(%arg0: i32) -> (i32, i32) {
    %c0_i32 = arith.constant 0 : i32
    %c0_i32_0 = arith.constant 0 : i32
    %c0_i32_1 = arith.constant 0 : i32
    return %c0_i32, %c0_i32_0 : i32, i32
  }
  func.func @transform_3(%arg0: i32) -> (i32, i32) {
    %c0_i32 = arith.constant 0 : i32
    %c0_i32_0 = arith.constant 0 : i32
    %c0_i32_1 = arith.constant 0 : i32
    return %c0_i32, %c0_i32_0 : i32, i32
  }
  func.func @transform_4(%arg0: i32) -> (i32, i32) {
    %c0_i32 = arith.constant 0 : i32
    %c0_i32_0 = arith.constant 0 : i32
    %c0_i32_1 = arith.constant 0 : i32
    return %c0_i32, %c0_i32_0 : i32, i32
  }
  func.func @transform_5(%arg0: i32) -> (i32, i32) {
    %c0_i32 = arith.constant 0 : i32
    %c0_i32_0 = arith.constant 0 : i32
    return %arg0, %c0_i32 : i32, i32
  }
}

module attributes {stable_mosaic.version = 11 : i64} {
  func.func @_gemm_stats_kernel(%arg0: i32, %arg1: memref<256x128xbf16, #tpu.memory_space<vmem>>, %arg2: memref<128x128xbf16, #tpu.memory_space<vmem>>, %arg3: memref<256x128xf32, #tpu.memory_space<vmem>>, %arg4: memref<1x128xf32, #tpu.memory_space<vmem>>, %arg5: memref<1x128xf32, #tpu.memory_space<vmem>>) attributes {dimension_semantics = [#tpu.dimension_semantics<arbitrary>], iteration_bounds = array<i64: 2>, scalar_prefetch = 0 : i64, scratch_operands = 0 : i64, tpu.core_type = #tpu.core_type<tc>, window_params = [{transform_indices = @transform_0, window_bounds = array<i64: 256, 128>}, {pipeline_mode = #tpu.pipeline_mode<synchronous>, transform_indices = @transform_1, window_bounds = array<i64: 128, 128>}, {transform_indices = @transform_2, window_bounds = array<i64: 256, 128>}, {pipeline_mode = #tpu.pipeline_mode<synchronous>, transform_indices = @transform_3, window_bounds = array<i64: 1, 128>}, {pipeline_mode = #tpu.pipeline_mode<synchronous>, transform_indices = @transform_4, window_bounds = array<i64: 1, 128>}]} {
    %c0 = arith.constant 0 : index
    %c0_0 = arith.constant 0 : index
    %0 = vector.load %arg1[%c0, %c0_0] : memref<256x128xbf16, #tpu.memory_space<vmem>>, vector<256x128xbf16>
    %c0_1 = arith.constant 0 : index
    %c0_2 = arith.constant 0 : index
    %1 = vector.load %arg2[%c0_1, %c0_2] : memref<128x128xbf16, #tpu.memory_space<vmem>>, vector<128x128xbf16>
    %cst = arith.constant dense<0.000000e+00> : vector<256x128xf32>
    %2 = tpu.matmul %0, %1, %cst {dimension_numbers = #tpu.dot_dimension_numbers<[1], [0], [0], [1], [0, 0, 1, 1], [], []>} : vector<256x128xbf16>, vector<128x128xbf16>, vector<256x128xf32> -> vector<256x128xf32>
    %c0_3 = arith.constant 0 : index
    %c0_4 = arith.constant 0 : index
    %3 = vector.load %arg3[%c0_3, %c0_4] : memref<256x128xf32, #tpu.memory_space<vmem>>, vector<256x128xf32>
    tpu.vector_store %arg3[%c0_3, %c0_4], %2 {strides = array<i32>} : memref<256x128xf32, #tpu.memory_space<vmem>>, vector<256x128xf32>,
    %c0_i32 = arith.constant 0 : i32
    %4 = arith.cmpi eq, %arg0, %c0_i32 : i32
    %5 = arith.extui %4 : i1 to i32
    %c0_i32_5 = arith.constant 0 : i32
    %6 = arith.cmpi ne, %5, %c0_i32_5 : i32
    scf.if %6 {
      %cst_16 = arith.constant 0.000000e+00 : f32
      %18 = vector.broadcast %cst_16 : f32 to vector<1x128xf32>
      %c0_17 = arith.constant 0 : index
      %c0_18 = arith.constant 0 : index
      %19 = vector.load %arg4[%c0_17, %c0_18] : memref<1x128xf32, #tpu.memory_space<vmem>>, vector<1x128xf32>
      tpu.vector_store %arg4[%c0_17, %c0_18], %18 {strides = array<i32>} : memref<1x128xf32, #tpu.memory_space<vmem>>, vector<1x128xf32>,
      %cst_19 = arith.constant 0.000000e+00 : f32
      %20 = vector.broadcast %cst_19 : f32 to vector<1x128xf32>
      %c0_20 = arith.constant 0 : index
      %c0_21 = arith.constant 0 : index
      %21 = vector.load %arg5[%c0_20, %c0_21] : memref<1x128xf32, #tpu.memory_space<vmem>>, vector<1x128xf32>
      tpu.vector_store %arg5[%c0_20, %c0_21], %20 {strides = array<i32>} : memref<1x128xf32, #tpu.memory_space<vmem>>, vector<1x128xf32>,
    } else {
    }
    %c0_6 = arith.constant 0 : index
    %c0_7 = arith.constant 0 : index
    %7 = vector.load %arg4[%c0_6, %c0_7] : memref<1x128xf32, #tpu.memory_space<vmem>>, vector<1x128xf32>
    %cst_8 = arith.constant dense<0.000000e+00> : vector<128xf32>
    %8 = vector.multi_reduction <add>, %2, %cst_8 [0] : vector<256x128xf32> to vector<128xf32>
    %9 = vector.shape_cast %8 : vector<128xf32> to vector<1x128xf32>
    %10 = arith.addf %7, %9 : vector<1x128xf32>
    %c0_9 = arith.constant 0 : index
    %c0_10 = arith.constant 0 : index
    %11 = vector.load %arg4[%c0_9, %c0_10] : memref<1x128xf32, #tpu.memory_space<vmem>>, vector<1x128xf32>
    tpu.vector_store %arg4[%c0_9, %c0_10], %10 {strides = array<i32>} : memref<1x128xf32, #tpu.memory_space<vmem>>, vector<1x128xf32>,
    %c0_11 = arith.constant 0 : index
    %c0_12 = arith.constant 0 : index
    %12 = vector.load %arg5[%c0_11, %c0_12] : memref<1x128xf32, #tpu.memory_space<vmem>>, vector<1x128xf32>
    %13 = arith.mulf %2, %2 : vector<256x128xf32>
    %cst_13 = arith.constant dense<0.000000e+00> : vector<128xf32>
    %14 = vector.multi_reduction <add>, %13, %cst_13 [0] : vector<256x128xf32> to vector<128xf32>
    %15 = vector.shape_cast %14 : vector<128xf32> to vector<1x128xf32>
    %16 = arith.addf %12, %15 : vector<1x128xf32>
    %c0_14 = arith.constant 0 : index
    %c0_15 = arith.constant 0 : index
    %17 = vector.load %arg5[%c0_14, %c0_15] : memref<1x128xf32, #tpu.memory_space<vmem>>, vector<1x128xf32>
    tpu.vector_store %arg5[%c0_14, %c0_15], %16 {strides = array<i32>} : memref<1x128xf32, #tpu.memory_space<vmem>>, vector<1x128xf32>,
    return
  }
  func.func @transform_0(%arg0: i32) -> (i32, i32) {
    %c0_i32 = arith.constant 0 : i32
    %c0_i32_0 = arith.constant 0 : i32
    return %arg0, %c0_i32 : i32, i32
  }
  func.func @transform_1(%arg0: i32) -> (i32, i32) {
    %c0_i32 = arith.constant 0 : i32
    %c0_i32_0 = arith.constant 0 : i32
    %c0_i32_1 = arith.constant 0 : i32
    return %c0_i32, %c0_i32_0 : i32, i32
  }
  func.func @transform_2(%arg0: i32) -> (i32, i32) {
    %c0_i32 = arith.constant 0 : i32
    %c0_i32_0 = arith.constant 0 : i32
    return %arg0, %c0_i32 : i32, i32
  }
  func.func @transform_3(%arg0: i32) -> (i32, i32) {
    %c0_i32 = arith.constant 0 : i32
    %c0_i32_0 = arith.constant 0 : i32
    %c0_i32_1 = arith.constant 0 : i32
    return %c0_i32, %c0_i32_0 : i32, i32
  }
  func.func @transform_4(%arg0: i32) -> (i32, i32) {
    %c0_i32 = arith.constant 0 : i32
    %c0_i32_0 = arith.constant 0 : i32
    %c0_i32_1 = arith.constant 0 : i32
    return %c0_i32, %c0_i32_0 : i32, i32
  }
}

module attributes {stable_mosaic.version = 11 : i64} {
  func.func @_bn_relu_kernel(%arg0: i32, %arg1: memref<256x128xf32, #tpu.memory_space<vmem>>, %arg2: memref<1x128xf32, #tpu.memory_space<vmem>>, %arg3: memref<1x128xf32, #tpu.memory_space<vmem>>, %arg4: memref<1x128xf32, #tpu.memory_space<vmem>>, %arg5: memref<1x128xf32, #tpu.memory_space<vmem>>, %arg6: memref<256x128xf32, #tpu.memory_space<vmem>>) attributes {dimension_semantics = [#tpu.dimension_semantics<parallel>], iteration_bounds = array<i64: 2>, scalar_prefetch = 0 : i64, scratch_operands = 0 : i64, tpu.core_type = #tpu.core_type<tc>, window_params = [{transform_indices = @transform_0, window_bounds = array<i64: 256, 128>}, {pipeline_mode = #tpu.pipeline_mode<synchronous>, transform_indices = @transform_1, window_bounds = array<i64: 1, 128>}, {pipeline_mode = #tpu.pipeline_mode<synchronous>, transform_indices = @transform_2, window_bounds = array<i64: 1, 128>}, {pipeline_mode = #tpu.pipeline_mode<synchronous>, transform_indices = @transform_3, window_bounds = array<i64: 1, 128>}, {pipeline_mode = #tpu.pipeline_mode<synchronous>, transform_indices = @transform_4, window_bounds = array<i64: 1, 128>}, {transform_indices = @transform_5, window_bounds = array<i64: 256, 128>}]} {
    %c0 = arith.constant 0 : index
    %c0_0 = arith.constant 0 : index
    %0 = vector.load %arg2[%c0, %c0_0] : memref<1x128xf32, #tpu.memory_space<vmem>>, vector<1x128xf32>
    %cst = arith.constant 0.001953125 : f32
    %1 = vector.broadcast %cst : f32 to vector<1x128xf32>
    %2 = arith.mulf %0, %1 : vector<1x128xf32>
    %c0_1 = arith.constant 0 : index
    %c0_2 = arith.constant 0 : index
    %3 = vector.load %arg3[%c0_1, %c0_2] : memref<1x128xf32, #tpu.memory_space<vmem>>, vector<1x128xf32>
    %cst_3 = arith.constant 0.001953125 : f32
    %4 = vector.broadcast %cst_3 : f32 to vector<1x128xf32>
    %5 = arith.mulf %3, %4 : vector<1x128xf32>
    %6 = arith.mulf %2, %2 : vector<1x128xf32>
    %7 = arith.subf %5, %6 : vector<1x128xf32>
    %cst_4 = arith.constant 0.000000e+00 : f32
    %8 = vector.broadcast %cst_4 : f32 to vector<1x128xf32>
    %9 = arith.maximumf %7, %8 : vector<1x128xf32>
    %c0_5 = arith.constant 0 : index
    %c0_6 = arith.constant 0 : index
    %10 = vector.load %arg4[%c0_5, %c0_6] : memref<1x128xf32, #tpu.memory_space<vmem>>, vector<1x128xf32>
    %cst_7 = arith.constant 9.99999974E-6 : f32
    %11 = vector.broadcast %cst_7 : f32 to vector<1x128xf32>
    %12 = arith.addf %9, %11 : vector<1x128xf32>
    %13 = math.rsqrt %12 : vector<1x128xf32>
    %14 = arith.mulf %10, %13 : vector<1x128xf32>
    %c0_8 = arith.constant 0 : index
    %c0_9 = arith.constant 0 : index
    %15 = vector.load %arg5[%c0_8, %c0_9] : memref<1x128xf32, #tpu.memory_space<vmem>>, vector<1x128xf32>
    %16 = arith.mulf %2, %14 : vector<1x128xf32>
    %17 = arith.subf %15, %16 : vector<1x128xf32>
    %c0_10 = arith.constant 0 : index
    %c0_11 = arith.constant 0 : index
    %18 = vector.load %arg1[%c0_10, %c0_11] : memref<256x128xf32, #tpu.memory_space<vmem>>, vector<256x128xf32>
    %19 = vector.broadcast %14 : vector<1x128xf32> to vector<256x128xf32>
    %20 = arith.mulf %18, %19 : vector<256x128xf32>
    %21 = vector.broadcast %17 : vector<1x128xf32> to vector<256x128xf32>
    %22 = arith.addf %20, %21 : vector<256x128xf32>
    %cst_12 = arith.constant 0.000000e+00 : f32
    %23 = vector.broadcast %cst_12 : f32 to vector<256x128xf32>
    %24 = arith.maximumf %22, %23 : vector<256x128xf32>
    %c0_13 = arith.constant 0 : index
    %c0_14 = arith.constant 0 : index
    %25 = vector.load %arg6[%c0_13, %c0_14] : memref<256x128xf32, #tpu.memory_space<vmem>>, vector<256x128xf32>
    tpu.vector_store %arg6[%c0_13, %c0_14], %24 {strides = array<i32>} : memref<256x128xf32, #tpu.memory_space<vmem>>, vector<256x128xf32>,
    return
  }
  func.func @transform_0(%arg0: i32) -> (i32, i32) {
    %c0_i32 = arith.constant 0 : i32
    %c0_i32_0 = arith.constant 0 : i32
    return %arg0, %c0_i32 : i32, i32
  }
  func.func @transform_1(%arg0: i32) -> (i32, i32) {
    %c0_i32 = arith.constant 0 : i32
    %c0_i32_0 = arith.constant 0 : i32
    %c0_i32_1 = arith.constant 0 : i32
    return %c0_i32, %c0_i32_0 : i32, i32
  }
  func.func @transform_2(%arg0: i32) -> (i32, i32) {
    %c0_i32 = arith.constant 0 : i32
    %c0_i32_0 = arith.constant 0 : i32
    %c0_i32_1 = arith.constant 0 : i32
    return %c0_i32, %c0_i32_0 : i32, i32
  }
  func.func @transform_3(%arg0: i32) -> (i32, i32) {
    %c0_i32 = arith.constant 0 : i32
    %c0_i32_0 = arith.constant 0 : i32
    %c0_i32_1 = arith.constant 0 : i32
    return %c0_i32, %c0_i32_0 : i32, i32
  }
  func.func @transform_4(%arg0: i32) -> (i32, i32) {
    %c0_i32 = arith.constant 0 : i32
    %c0_i32_0 = arith.constant 0 : i32
    %c0_i32_1 = arith.constant 0 : i32
    return %c0_i32, %c0_i32_0 : i32, i32
  }
  func.func @transform_5(%arg0: i32) -> (i32, i32) {
    %c0_i32 = arith.constant 0 : i32
    %c0_i32_0 = arith.constant 0 : i32
    return %arg0, %c0_i32 : i32, i32
  }
}

</mosaic_0001>

<bundles_post_ra>
// kernel: double_conv.5
= control target key start
LH: loop header
LB: loop body
LE: loop exit
PB: predicated region body
PF: predicated region fallthrough
CT: control target
= control target key end

     0   :  { %s659_s18 = smov 0   ;;  %s812_s0 = inlined_call_operand.vmem [shape: f32[512,128], index: 0, kind: input, shape index: {}]   ;;  %s813_s1 = inlined_call_operand.vmem [shape: f32[1,128], index: 1, kind: input, shape index: {}]   ;;  %s814_s2 = inlined_call_operand.vmem [shape: f32[1,128], index: 2, kind: input, shape index: {}]   ;;  %s815_s3 = inlined_call_operand.vmem [shape: f32[1,128], index: 3, kind: input, shape index: {}]   ;;  %s816_s4 = inlined_call_operand.vmem [shape: f32[1,128], index: 4, kind: input, shape index: {}]   ;;  %s817_s5 = inlined_call_operand.vmem [shape: bf16[512,128], index: 5, kind: output, shape index: {}]  }
   0x1 LB: > { %s505_s19 = sadd.s32 4294967295, %s627_s18   ;;  %p509_p0 = scmp.ge.s32.totalorder %s627_s18, 1  ;;  %s627_s18 = sphi %s659_s18, %s15_s18  }
   0x2   : > { %p188_p1 = scmp.lt.s32.totalorder %s627_s18, 3 }
   0x4   : > { %p189_p2 = pnand %p509_p0, %p188_p1 }
   0x5   : > { %s510_s24 = sshll.u32 (!%p189_p2), %s505_s19, 5 }
   0x6   : > { %192 = sbr.rel (%p189_p2) target bundleno = 78 (0x4e), region = 40  ;;  %p217_p3 = scmp.lt.s32.totalorder (!%p189_p2), %s510_s24, 63 }
   0xb   : > { %v228_v0 = vld [vmem:[%s813_s1] sm:$0x1]  ;;  %s819_s24 = smov (!%p217_p3, %s510_s24), 63 }
   0xc   : > { %v230_v1 = vld [vmem:[%s814_s2] sm:$0x1]  ;;  %v229_v2 = vmul.f32 0.001953125, %v228_v0  ;;  %s511_s25 = sshll.u32 %s819_s24, 3  ;;  %s513_s8 = sshll.u32 %s819_s24, 2 }
   0xd   : > { %v231_v3 = vmul.f32 0.001953125, %v230_v1  ;;  %s679_s28 = scalar_lea.vmem %s812_s0, %s511_s25  ;;  %v235_v13 = vld [vmem:[%s815_s3] sm:$0x1]  ;;  %s731_s11 = scalar_lea.vmem %s817_s5, %s513_s8 }
   0xe   : > { %v232_v4 = vmul.f32 %v229_v2, %v229_v2  ;;  %v248_v17 = vld [vmem:[%s816_s4] sm:$0x1]  ;;  %v252_v19 = vld [vmem:[%s679_s28 + $0x8] sm:$0xff]  ;;  %v253_v20 = vld [vmem:[%s679_s28 + $0x10] sm:$0xff] }
   0xf   : > { %v251_v18 = vld [vmem:[%s679_s28] sm:$0xff]  ;;  %v254_v21 = vld [vmem:[%s679_s28 + $0x18] sm:$0xff]  ;;  %v256_v25 = vld [vmem:[%s679_s28 + $0x28] sm:$0xff] }
  0x10   : > { %v233_v5 = vsub.f32 %v231_v3, %v232_v4  ;;  %v255_v22 = vld [vmem:[%s679_s28 + $0x20] sm:$0xff]  ;;  %v257_v26 = vld [vmem:[%s679_s28 + $0x30] sm:$0xff]  ;;  %v258_v27 = vld [vmem:[%s679_s28 + $0x38] sm:$0xff] }
  0x11   : > { %v259_v28 = vld [vmem:[%s679_s28 + $0x40] sm:$0xff]  ;;  %v260_v29 = vld [vmem:[%s679_s28 + $0x48] sm:$0xff]  ;;  %v261_v30 = vld [vmem:[%s679_s28 + $0x50] sm:$0xff] }
  0x12   : > { %v234_v6 = vmax.f32 %v233_v5, 0.0  ;;  %v262_v35 = vld [vmem:[%s679_s28 + $0x58] sm:$0xff]  ;;  %v263_v36 = vld [vmem:[%s679_s28 + $0x60] sm:$0xff]  ;;  %v264_v37 = vld [vmem:[%s679_s28 + $0x68] sm:$0xff] }
  0x14   : > { %v236_v7 = vadd.f32 1e-05, %v234_v6  ;;  %v265_v6 = vld [vmem:[%s679_s28 + $0x70] sm:$0xff] }
  0x16   : > { %619 = vrsqrt.f32 %v236_v7  ;;  %vm243_vm0 = vweird.f32 %v236_v7 }
  0x1c   : > { %v620_v8 = vpop.eup %619 }
  0x1d   : > { %v238_v9 = vmul.f32 %v620_v8, %v236_v7  ;;  %vm244_vm1 = vweird.f32 %v620_v8  ;;  %v266_v7 = vld [vmem:[%s679_s28 + $0x78] sm:$0xff] }
  0x1e   : > { %vm245_vm2 = vmor %vm243_vm0, %vm244_vm1 }
  0x1f   : > { %v239_v10 = vmul.f32 %v620_v8, %v238_v9 }
  0x21   : > { %v240_v11 = vmul.f32 0.5, %v239_v10 }
  0x23   : > { %v241_v12 = vsub.f32 1.5, %v240_v11 }
  0x25   : > { %v242_v14 = vmul.f32 %v620_v8, %v241_v12  ;;  %v267_v12 = vld [vmem:[%s679_s28 + $0x80] sm:$0xff] }
  0x27   : > { %v246_v15 = vsel %vm245_vm2, %v620_v8, %v242_v14 }
  0x28   : > { %v247_v16 = vmul.f32 %v246_v15, %v235_v13 }
  0x2a   : > { %v249_v23 = vmul.f32 %v247_v16, %v229_v2  ;;  %v692_v24 = vperm.slane %v247_v16, 0 }
  0x2c   : > { %v250_v31 = vsub.f32 %v248_v17, %v249_v23  ;;  %v286_v32 = vmul.f32 %v692_v24, %v251_v18  ;;  %v287_v33 = vmul.f32 %v692_v24, %v252_v19  ;;  %v288_v34 = vmul.f32 %v692_v24, %v253_v20  ;;  %v268_v17 = vld [vmem:[%s679_s28 + $0x88] sm:$0xff]  ;;  %v270_v23 = vld [vmem:[%s679_s28 + $0x98] sm:$0xff] }
  0x2d   : > { %v289_v38 = vmul.f32 %v692_v24, %v254_v21  ;;  %v290_v39 = vmul.f32 %v692_v24, %v255_v22  ;;  %v291_v40 = vmul.f32 %v692_v24, %v256_v25  ;;  %v292_v41 = vmul.f32 %v692_v24, %v257_v26  ;;  %v269_v22 = vld [vmem:[%s679_s28 + $0x90] sm:$0xff] }
  0x2e   : > { %v710_v42 = vperm.slane %v250_v31, 0  ;;  %v293_v43 = vmul.f32 %v692_v24, %v258_v27  ;;  %v294_v44 = vmul.f32 %v692_v24, %v259_v28  ;;  %v295_v45 = vmul.f32 %v692_v24, %v260_v29  ;;  %v271_v29 = vld [vmem:[%s679_s28 + $0xa0] sm:$0xff] }
  0x2f   : > { %v296_v46 = vmul.f32 %v692_v24, %v261_v30  ;;  %v297_v47 = vmul.f32 %v692_v24, %v262_v35  ;;  %v298_v48 = vmul.f32 %v692_v24, %v263_v36  ;;  %v299_v49 = vmul.f32 %v692_v24, %v264_v37 }
  0x30   : > { %v321_v50 = vadd.f32 %v710_v42, %v286_v32  ;;  %v322_v51 = vadd.f32 %v710_v42, %v287_v33  ;;  %v323_v52 = vadd.f32 %v710_v42, %v288_v34  ;;  %v324_v53 = vadd.f32 %v710_v42, %v289_v38  ;;  %v272_v34 = vld [vmem:[%s679_s28 + $0xa8] sm:$0xff] }
  0x31   : > { %v325_v54 = vadd.f32 %v710_v42, %v290_v39  ;;  %v326_v55 = vadd.f32 %v710_v42, %v291_v40  ;;  %v327_v56 = vadd.f32 %v710_v42, %v292_v41  ;;  %v328_v57 = vadd.f32 %v710_v42, %v293_v43  ;;  %v273_v39 = vld [vmem:[%s679_s28 + $0xb0] sm:$0xff] }
  0x32   : > { %v353_v58 = vmax.f32 %v321_v50, 0.0  ;;  %v354_v59 = vmax.f32 %v322_v51, 0.0  ;;  %v355_v60 = vmax.f32 %v323_v52, 0.0  ;;  %v356_v61 = vmax.f32 %v324_v53, 0.0  ;;  %v275_v50 = vld [vmem:[%s679_s28 + $0xc0] sm:$0xff] }
  0x33   : > { %v357_v62 = vmax.f32 %v325_v54, 0.0  ;;  %v358_v63 = vmax.f32 %v326_v55, 0.0  ;;  %v359_v0 = vmax.f32 %v327_v56, 0.0  ;;  %v360_v1 = vmax.f32 %v328_v57, 0.0  ;;  %v276_v55 = vld [vmem:[%s679_s28 + $0xc8] sm:$0xff] }
  0x34   : > { %v519_v2 = vpack.c.bf16 %v354_v59, %v353_v58  ;;  %v524_v3 = vpack.c.bf16 %v356_v61, %v355_v60  ;;  %v329_v4 = vadd.f32 %v710_v42, %v294_v44  ;;  %v330_v5 = vadd.f32 %v710_v42, %v295_v45  ;;  %v274_v45 = vld [vmem:[%s679_s28 + $0xb8] sm:$0xff]  ;;  %v277_v60 = vld [vmem:[%s679_s28 + $0xd0] sm:$0xff] }
  0x35   : > { %v529_v8 = vpack.c.bf16 %v358_v63, %v357_v62  ;;  %v534_v9 = vpack.c.bf16 %v360_v1, %v359_v0  ;;  %v331_v10 = vadd.f32 %v710_v42, %v296_v46  ;;  %v332_v11 = vadd.f32 %v710_v42, %v297_v47  ;;  %v278_v61 = vld [vmem:[%s679_s28 + $0xd8] sm:$0xff] }
  0x36   : > { %520 = vst [vmem:[%s731_s11] sm:$0xff] %v519_v2   ;;  %v361_v13 = vmax.f32 %v329_v4, 0.0  ;;  %v362_v14 = vmax.f32 %v330_v5, 0.0  ;;  %v333_v15 = vadd.f32 %v710_v42, %v298_v48  ;;  %v334_v16 = vadd.f32 %v710_v42, %v299_v49  ;;  %v279_v2 = vld [vmem:[%s679_s28 + $0xe0] sm:$0xff] }
  0x37   : > { %596 = vst [vmem:[%s731_s11 + $0x8] sm:$0xff] %v524_v3   ;;  %v363_v18 = vmax.f32 %v331_v10, 0.0  ;;  %v364_v19 = vmax.f32 %v332_v11, 0.0  ;;  %v300_v20 = vmul.f32 %v692_v24, %v265_v6  ;;  %v301_v21 = vmul.f32 %v692_v24, %v266_v7  ;;  %v280_v7 = vld [vmem:[%s679_s28 + $0xe8] sm:$0xff] }
  0x38   : > { %597 = vst [vmem:[%s731_s11 + $0x10] sm:$0xff] %v529_v8   ;;  %v539_v25 = vpack.c.bf16 %v362_v14, %v361_v13  ;;  %v365_v26 = vmax.f32 %v333_v15, 0.0  ;;  %v366_v27 = vmax.f32 %v334_v16, 0.0  ;;  %v302_v28 = vmul.f32 %v692_v24, %v267_v12  ;;  %v281_v12 = vld [vmem:[%s679_s28 + $0xf0] sm:$0xff] }
  0x39   : > { %598 = vst [vmem:[%s731_s11 + $0x18] sm:$0xff] %v534_v9   ;;  %v544_v30 = vpack.c.bf16 %v364_v19, %v363_v18  ;;  %v335_v31 = vadd.f32 %v710_v42, %v300_v20  ;;  %v336_v32 = vadd.f32 %v710_v42, %v301_v21  ;;  %v303_v33 = vmul.f32 %v692_v24, %v268_v17  ;;  %v282_v17 = vld [vmem:[%s679_s28 + $0xf8] sm:$0xff] }
  0x3a   : > { %599 = vst [vmem:[%s731_s11 + $0x20] sm:$0xff] %v539_v25   ;;  %v549_v35 = vpack.c.bf16 %v366_v27, %v365_v26  ;;  %v337_v36 = vadd.f32 %v710_v42, %v302_v28  ;;  %v304_v37 = vmul.f32 %v692_v24, %v269_v22  ;;  %v305_v38 = vmul.f32 %v692_v24, %v270_v23 }
  0x3b   : > { %600 = vst [vmem:[%s731_s11 + $0x28] sm:$0xff] %v544_v30   ;;  %v367_v40 = vmax.f32 %v335_v31, 0.0  ;;  %v368_v41 = vmax.f32 %v336_v32, 0.0  ;;  %v338_v43 = vadd.f32 %v710_v42, %v303_v33  ;;  %v306_v44 = vmul.f32 %v692_v24, %v271_v29 }
  0x3c   : > { %601 = vst [vmem:[%s731_s11 + $0x30] sm:$0xff] %v549_v35   ;;  %v369_v46 = vmax.f32 %v337_v36, 0.0  ;;  %v339_v47 = vadd.f32 %v710_v42, %v304_v37  ;;  %v340_v48 = vadd.f32 %v710_v42, %v305_v38  ;;  %v307_v49 = vmul.f32 %v692_v24, %v272_v34 }
  0x3d   : > { %v554_v51 = vpack.c.bf16 %v368_v41, %v367_v40  ;;  %v370_v52 = vmax.f32 %v338_v43, 0.0  ;;  %v341_v53 = vadd.f32 %v710_v42, %v306_v44  ;;  %v308_v54 = vmul.f32 %v692_v24, %v273_v39 }
  0x3e   : > { %v371_v56 = vmax.f32 %v339_v47, 0.0  ;;  %v372_v57 = vmax.f32 %v340_v48, 0.0  ;;  %v342_v58 = vadd.f32 %v710_v42, %v307_v49  ;;  %v309_v59 = vmul.f32 %v692_v24, %v274_v45 }
  0x3f   : > { %602 = vst [vmem:[%s731_s11 + $0x38] sm:$0xff] %v554_v51   ;;  %v559_v62 = vpack.c.bf16 %v370_v52, %v369_v46  ;;  %v373_v63 = vmax.f32 %v341_v53, 0.0  ;;  %v343_v0 = vadd.f32 %v710_v42, %v308_v54  ;;  %v310_v1 = vmul.f32 %v692_v24, %v275_v50 }
  0x40   : > { %v564_v3 = vpack.c.bf16 %v372_v57, %v371_v56  ;;  %v374_v4 = vmax.f32 %v342_v58, 0.0  ;;  %v344_v5 = vadd.f32 %v710_v42, %v309_v59  ;;  %v311_v6 = vmul.f32 %v692_v24, %v276_v55 }
  0x41   : > { %603 = vst [vmem:[%s731_s11 + $0x40] sm:$0xff] %v559_v62   ;;  %v375_v8 = vmax.f32 %v343_v0, 0.0  ;;  %v345_v9 = vadd.f32 %v710_v42, %v310_v1  ;;  %v312_v10 = vmul.f32 %v692_v24, %v277_v60  ;;  %v313_v11 = vmul.f32 %v692_v24, %v278_v61 }
  0x42   : > { %604 = vst [vmem:[%s731_s11 + $0x48] sm:$0xff] %v564_v3   ;;  %v569_v13 = vpack.c.bf16 %v374_v4, %v373_v63  ;;  %v376_v14 = vmax.f32 %v344_v5, 0.0  ;;  %v346_v15 = vadd.f32 %v710_v42, %v311_v6  ;;  %v314_v16 = vmul.f32 %v692_v24, %v279_v2 }
  0x43   : > { %v377_v18 = vmax.f32 %v345_v9, 0.0  ;;  %v347_v19 = vadd.f32 %v710_v42, %v312_v10  ;;  %v348_v20 = vadd.f32 %v710_v42, %v313_v11  ;;  %v315_v21 = vmul.f32 %v692_v24, %v280_v7 }
  0x44   : > { %605 = vst [vmem:[%s731_s11 + $0x50] sm:$0xff] %v569_v13   ;;  %v574_v22 = vpack.c.bf16 %v376_v14, %v375_v8  ;;  %v378_v23 = vmax.f32 %v346_v15, 0.0  ;;  %v349_v25 = vadd.f32 %v710_v42, %v314_v16  ;;  %v316_v26 = vmul.f32 %v692_v24, %v281_v12 }
  0x45   : > { %v379_v27 = vmax.f32 %v347_v19, 0.0  ;;  %v380_v28 = vmax.f32 %v348_v20, 0.0  ;;  %v350_v29 = vadd.f32 %v710_v42, %v315_v21  ;;  %v317_v30 = vmul.f32 %v692_v24, %v282_v17 }
  0x46   : > { %606 = vst [vmem:[%s731_s11 + $0x58] sm:$0xff] %v574_v22   ;;  %v579_v31 = vpack.c.bf16 %v378_v23, %v377_v18  ;;  %v381_v32 = vmax.f32 %v349_v25, 0.0  ;;  %v351_v33 = vadd.f32 %v710_v42, %v316_v26 }
  0x47   : > { %v584_v34 = vpack.c.bf16 %v380_v28, %v379_v27  ;;  %v382_v35 = vmax.f32 %v350_v29, 0.0  ;;  %v352_v36 = vadd.f32 %v710_v42, %v317_v30 }
  0x48   : > { %607 = vst [vmem:[%s731_s11 + $0x60] sm:$0xff] %v579_v31   ;;  %v383_v37 = vmax.f32 %v351_v33, 0.0 }
  0x49   : > { %608 = vst [vmem:[%s731_s11 + $0x68] sm:$0xff] %v584_v34   ;;  %v589_v38 = vpack.c.bf16 %v382_v35, %v381_v32  ;;  %v384_v39 = vmax.f32 %v352_v36, 0.0 }
  0x4b   : > { %609 = vst [vmem:[%s731_s11 + $0x70] sm:$0xff] %v589_v38   ;;  %v594_v40 = vpack.c.bf16 %v384_v39, %v383_v37 }
  0x4d   : > { %610 = vst [vmem:[%s731_s11 + $0x78] sm:$0xff] %v594_v40  }
  0x4e PF: > { %s15_s18 = sadd.s32 1, %s627_s18  }
  0x4f   : > { %p12_p4 = scmp.ge.s32.totalorder %s15_s18, 4  }
  0x51   :  { %14 = sbr.rel (!%p12_p4) target bundleno = 1 (0x1), region = 70 }

// kernel: double_conv.4
= control target key start
LH: loop header
LB: loop body
LE: loop exit
PB: predicated region body
PF: predicated region fallthrough
CT: control target
= control target key end

     0   :  { %s894_s15 = smov 0   ;;  %s1157_s0 = inlined_call_operand.vmem [shape: bf16[512,128], index: 0, kind: input, shape index: {}]   ;;  %s1158_s1 = inlined_call_operand.vmem [shape: bf16[128,128], index: 1, kind: input, shape index: {}]   ;;  %s1159_s2 = inlined_call_operand.vmem [shape: f32[512,128], index: 2, kind: output, shape index: {0}]   ;;  %s1160_s3 = inlined_call_operand.vmem [shape: f32[1,128], index: 3, kind: output, shape index: {1}]   ;;  %s1161_s4 = inlined_call_operand.vmem [shape: f32[1,128], index: 4, kind: output, shape index: {2}]  }
   0x1 LB: > { %s695_s16 = sadd.s32 4294967295, %s866_s15   ;;  %p699_p0 = scmp.ge.s32.totalorder %s866_s15, 1  ;;  %s866_s15 = sphi %s894_s15, %s15_s15  }
   0x2   : > { %p158_p1 = scmp.lt.s32.totalorder %s866_s15, 3 }
   0x4   : > { %p159_p2 = pnand %p699_p0, %p158_p1 }
   0x5   : > { %s700_s25 = sshll.u32 (!%p159_p2), %s695_s16, 5  ;;  %p800_p4 = scmp.ne.s32.totalorder (!%p159_p2), %s695_s16, 0 }
   0x6   : > { %162 = sbr.rel (%p159_p2) target bundleno = 316 (0x13c), region = 28  ;;  %p185_p3 = scmp.lt.s32.totalorder (!%p159_p2), %s700_s25, 63 }
   0xb   : > { %v826_v0 = vld [vmem:[%s1158_s1 + $0x38] sm:$0xff]  ;;  %v825_v1 = vld [vmem:[%s1158_s1 + $0x30] sm:$0xff]  ;;  %v824_v2 = vld [vmem:[%s1158_s1 + $0x28] sm:$0xff]  ;;  %s1163_s25 = smov (!%p185_p3, %s700_s25), 63 }
   0xc   : > { %388 = vmatpush.bf16.msra.mxu0 %v826_v0  ;;  %827 = vmatpush.bf16.msra.mxu1 %v826_v0  ;;  %v823_v3 = vld [vmem:[%s1158_s1 + $0x20] sm:$0xff]  ;;  %v822_v4 = vld [vmem:[%s1158_s1 + $0x18] sm:$0xff]  ;;  %v821_v5 = vld [vmem:[%s1158_s1 + $0x10] sm:$0xff]  ;;  %s701_s6 = sshll.u32 %s1163_s25, 2  ;;  %s703_s12 = sshll.u32 %s1163_s25, 3 }
   0xd   : > { %828 = vmatpush.bf16.msra.mxu2 %v826_v0  ;;  %829 = vmatpush.bf16.msra.mxu3 %v826_v0  ;;  %v820_v6 = vld [vmem:[%s1158_s1 + $0x8] sm:$0xff]  ;;  %v819_v7 = vld [vmem:[%s1158_s1] sm:$0xff]  ;;  %s934_s11 = scalar_lea.vmem %s1157_s0, %s701_s6  ;;  %s956_s17 = scalar_lea.vmem %s1159_s2, %s703_s12 }
   0xe   : > { %v803_v8 = vld [vmem:[%s934_s11] sm:$0xff]  ;;  %v804_v12 = vld [vmem:[%s934_s11 + $0x8] sm:$0xff]  ;;  %v805_v16 = vld [vmem:[%s934_s11 + $0x10] sm:$0xff] }
   0xf   : > { %v807_v9 = vld [vmem:[%s934_s11 + $0x20] sm:$0xff]  ;;  %v808_v13 = vld [vmem:[%s934_s11 + $0x28] sm:$0xff]  ;;  %v809_v17 = vld [vmem:[%s934_s11 + $0x30] sm:$0xff] }
  0x10   : > { %389 = vmatpush.bf16.msra.mxu0 %v825_v1  ;;  %830 = vmatpush.bf16.msra.mxu1 %v825_v1  ;;  %v811_v10 = vld [vmem:[%s934_s11 + $0x40] sm:$0xff]  ;;  %v812_v14 = vld [vmem:[%s934_s11 + $0x48] sm:$0xff]  ;;  %v813_v18 = vld [vmem:[%s934_s11 + $0x50] sm:$0xff] }
  0x11   : > { %831 = vmatpush.bf16.msra.mxu2 %v825_v1  ;;  %832 = vmatpush.bf16.msra.mxu3 %v825_v1  ;;  %v815_v11 = vld [vmem:[%s934_s11 + $0x60] sm:$0xff]  ;;  %v816_v15 = vld [vmem:[%s934_s11 + $0x68] sm:$0xff]  ;;  %v817_v19 = vld [vmem:[%s934_s11 + $0x70] sm:$0xff] }
  0x12   : > { %v806_v20 = vld [vmem:[%s934_s11 + $0x18] sm:$0xff] }
  0x13   : > { %v810_v21 = vld [vmem:[%s934_s11 + $0x38] sm:$0xff] }
  0x14   : > { %390 = vmatpush.bf16.msra.mxu0 %v824_v2  ;;  %833 = vmatpush.bf16.msra.mxu1 %v824_v2  ;;  %v814_v22 = vld [vmem:[%s934_s11 + $0x58] sm:$0xff] }
  0x15   : > { %834 = vmatpush.bf16.msra.mxu2 %v824_v2  ;;  %835 = vmatpush.bf16.msra.mxu3 %v824_v2  ;;  %v818_v23 = vld [vmem:[%s934_s11 + $0x78] sm:$0xff] }
  0x18   : > { %391 = vmatpush.bf16.msra.mxu0 %v823_v3  ;;  %836 = vmatpush.bf16.msra.mxu1 %v823_v3 }
  0x19   : > { %837 = vmatpush.bf16.msra.mxu2 %v823_v3  ;;  %838 = vmatpush.bf16.msra.mxu3 %v823_v3 }
  0x1c   : > { %392 = vmatpush.bf16.msra.mxu0 %v822_v4  ;;  %839 = vmatpush.bf16.msra.mxu1 %v822_v4 }
  0x1d   : > { %840 = vmatpush.bf16.msra.mxu2 %v822_v4  ;;  %841 = vmatpush.bf16.msra.mxu3 %v822_v4 }
  0x20   : > { %393 = vmatpush.bf16.msra.mxu0 %v821_v5  ;;  %842 = vmatpush.bf16.msra.mxu1 %v821_v5 }
  0x21   : > { %843 = vmatpush.bf16.msra.mxu2 %v821_v5  ;;  %844 = vmatpush.bf16.msra.mxu3 %v821_v5 }
  0x24   : > { %394 = vmatpush.bf16.msra.mxu0 %v820_v6  ;;  %845 = vmatpush.bf16.msra.mxu1 %v820_v6 }
  0x25   : > { %846 = vmatpush.bf16.msra.mxu2 %v820_v6  ;;  %847 = vmatpush.bf16.msra.mxu3 %v820_v6 }
  0x28   : > { %395 = vmatpush.bf16.msra.mxu0 %v819_v7  ;;  %848 = vmatpush.bf16.msra.mxu1 %v819_v7 }
  0x29   : > { %849 = vmatpush.bf16.msra.mxu2 %v819_v7  ;;  %850 = vmatpush.bf16.msra.mxu3 %v819_v7 }
  0x2b   : > { %396 = vmatmul.bf16.vlgmr.msra.gmra.mxu0 %v803_v8  ;;  %416 = vmatmul.bf16.vlgmr.msra.gmra.mxu1 %v807_v9 }
  0x2c   : > { %436 = vmatmul.bf16.vlgmr.msra.gmra.mxu2 %v811_v10  ;;  %456 = vmatmul.bf16.vlgmr.msra.gmra.mxu3 %v815_v11 }
  0x3b   : > { %401 = vmatmul.bf16.gmra.mxu0 %v804_v12  ;;  %421 = vmatmul.bf16.gmra.mxu1 %v808_v13 }
  0x3c   : > { %441 = vmatmul.bf16.gmra.mxu2 %v812_v14  ;;  %461 = vmatmul.bf16.gmra.mxu3 %v816_v15 }
  0x4b   : > { %406 = vmatmul.bf16.gmra.mxu0 %v805_v16  ;;  %426 = vmatmul.bf16.gmra.mxu1 %v809_v17 }
  0x4c   : > { %446 = vmatmul.bf16.gmra.mxu2 %v813_v18  ;;  %466 = vmatmul.bf16.gmra.mxu3 %v817_v19 }
  0x5b   : > { %411 = vmatmul.bf16.gmra.mxu0 %v806_v20  ;;  %431 = vmatmul.bf16.gmra.mxu1 %v810_v21 }
  0x5c   : > { %451 = vmatmul.bf16.gmra.mxu2 %v814_v22  ;;  %471 = vmatmul.bf16.gmra.mxu3 %v818_v23 }
  0xa8   : > { %v958_v24 = vpop.f32.mrf.mxu0  ;;  %v960_v25 = vpop.f32.mrf.mxu1 }
  0xa9   : > { %477 = vst [vmem:[%s956_s17] sm:$0xff] %v958_v24 }
  0xaa   : > { %485 = vst [vmem:[%s956_s17 + $0x40] sm:$0xff] %v960_v25 }
  0xaf   : > { %v966_v26 = vpop.f32.mrf.mxu2  ;;  %v968_v27 = vpop.f32.mrf.mxu3 }
  0xb0   : > { %493 = vst [vmem:[%s956_s17 + $0x80] sm:$0xff] %v966_v26  ;;  %v972_v28 = vpop.f32.mrf.mxu0  ;;  %v974_v29 = vpop.f32.mrf.mxu1 }
  0xb1   : > { %501 = vst [vmem:[%s956_s17 + $0xc0] sm:$0xff] %v968_v27 }
  0xb2   : > { %478 = vst [vmem:[%s956_s17 + $0x8] sm:$0xff] %v972_v28 }
  0xb3   : > { %486 = vst [vmem:[%s956_s17 + $0x48] sm:$0xff] %v974_v29 }
  0xb7   : > { %v982_v30 = vpop.f32.mrf.mxu2  ;;  %v984_v31 = vpop.f32.mrf.mxu3 }
  0xb8   : > { %494 = vst [vmem:[%s956_s17 + $0x88] sm:$0xff] %v982_v30  ;;  %v402_v32 = vpop.f32.mrf.mxu0  ;;  %v988_v33 = vpop.f32.mrf.mxu1 }
  0xb9   : > { %502 = vst [vmem:[%s956_s17 + $0xc8] sm:$0xff] %v984_v31 }
  0xba   : > { %479 = vst [vmem:[%s956_s17 + $0x10] sm:$0xff] %v402_v32 }
  0xbb   : > { %487 = vst [vmem:[%s956_s17 + $0x50] sm:$0xff] %v988_v33 }
  0xbf   : > { %v995_v34 = vpop.f32.mrf.mxu2  ;;  %v997_v35 = vpop.f32.mrf.mxu3 }
  0xc0   : > { %495 = vst [vmem:[%s956_s17 + $0x90] sm:$0xff] %v995_v34  ;;  %v404_v36 = vpop.f32.mrf.mxu0  ;;  %v1001_v37 = vpop.f32.mrf.mxu1 }
  0xc1   : > { %503 = vst [vmem:[%s956_s17 + $0xd0] sm:$0xff] %v997_v35 }
  0xc2   : > { %480 = vst [vmem:[%s956_s17 + $0x18] sm:$0xff] %v404_v36 }
  0xc3   : > { %488 = vst [vmem:[%s956_s17 + $0x58] sm:$0xff] %v1001_v37 }
  0xc7   : > { %v1008_v38 = vpop.f32.mrf.mxu2  ;;  %v1010_v39 = vpop.f32.mrf.mxu3 }
  0xc8   : > { %496 = vst [vmem:[%s956_s17 + $0x98] sm:$0xff] %v1008_v38  ;;  %v407_v40 = vpop.f32.mrf.mxu0  ;;  %v1014_v41 = vpop.f32.mrf.mxu1 }
  0xc9   : > { %504 = vst [vmem:[%s956_s17 + $0xd8] sm:$0xff] %v1010_v39 }
  0xca   : > { %481 = vst [vmem:[%s956_s17 + $0x20] sm:$0xff] %v407_v40 }
  0xcb   : > { %489 = vst [vmem:[%s956_s17 + $0x60] sm:$0xff] %v1014_v41 }
  0xcf   : > { %v1021_v42 = vpop.f32.mrf.mxu2  ;;  %v1023_v43 = vpop.f32.mrf.mxu3 }
  0xd0   : > { %497 = vst [vmem:[%s956_s17 + $0xa0] sm:$0xff] %v1021_v42  ;;  %v409_v44 = vpop.f32.mrf.mxu0  ;;  %v1027_v45 = vpop.f32.mrf.mxu1 }
  0xd1   : > { %505 = vst [vmem:[%s956_s17 + $0xe0] sm:$0xff] %v1023_v43 }
  0xd2   : > { %482 = vst [vmem:[%s956_s17 + $0x28] sm:$0xff] %v409_v44 }
  0xd3   : > { %490 = vst [vmem:[%s956_s17 + $0x68] sm:$0xff] %v1027_v45 }
  0xd7   : > { %v1034_v46 = vpop.f32.mrf.mxu2  ;;  %v1036_v47 = vpop.f32.mrf.mxu3 }
  0xd8   : > { %498 = vst [vmem:[%s956_s17 + $0xa8] sm:$0xff] %v1034_v46  ;;  %v412_v48 = vpop.f32.mrf.mxu0  ;;  %v432_v49 = vpop.f32.mrf.mxu1 }
  0xd9   : > { %506 = vst [vmem:[%s956_s17 + $0xe8] sm:$0xff] %v1036_v47 }
  0xda   : > { %483 = vst [vmem:[%s956_s17 + $0x30] sm:$0xff] %v412_v48 }
  0xdb   : > { %491 = vst [vmem:[%s956_s17 + $0x70] sm:$0xff] %v432_v49 }
  0xdf   : > { %v1044_v50 = vpop.f32.mrf.mxu2  ;;  %v1046_v51 = vpop.f32.mrf.mxu3 }
  0xe0   : > { %499 = vst [vmem:[%s956_s17 + $0xb0] sm:$0xff] %v1044_v50  ;;  %v414_v52 = vpop.f32.mrf.mxu0  ;;  %v434_v53 = vpop.f32.mrf.mxu1 }
  0xe1   : > { %507 = vst [vmem:[%s956_s17 + $0xf0] sm:$0xff] %v1046_v51 }
  0xe2   : > { %484 = vst [vmem:[%s956_s17 + $0x38] sm:$0xff] %v414_v52 }
  0xe3   : > { %492 = vst [vmem:[%s956_s17 + $0x78] sm:$0xff] %v434_v53 }
  0xe5   : > { %512 = sbr.rel (%p800_p4) target bundleno = 237 (0xed), region = 32 }
  0xe7   : > { %v1054_v54 = vpop.f32.mrf.mxu2  ;;  %v1056_v55 = vpop.f32.mrf.mxu3 }
  0xe8   : > { %500 = vst [vmem:[%s956_s17 + $0xb8] sm:$0xff] %v1054_v54 }
  0xe9   : > { %508 = vst [vmem:[%s956_s17 + $0xf8] sm:$0xff] %v1056_v55 }
  0xea   : > { %v868_v56 = vmov 0.0  }
  0xeb   : > { %513 = vst [vmem:[%s1160_s3] sm:$0x1] %v868_v56 }
  0xec   : > { %514 = vst [vmem:[%s1161_s4] sm:$0x1] %v868_v56 }
  0xed PF: > { %v516_v57 = vadd.f32 %v972_v28, %v958_v24  ;;  %v556_v58 = vmul.f32 %v958_v24, %v958_v24  ;;  %v557_v59 = vmul.f32 %v972_v28, %v972_v28  ;;  %v558_v61 = vmul.f32 %v402_v32, %v402_v32 }
  0xee   : > { %v559_v63 = vmul.f32 %v404_v36, %v404_v36  ;;  %v560_v2 = vmul.f32 %v407_v40, %v407_v40  ;;  %v561_v5 = vmul.f32 %v409_v44, %v409_v44  ;;  %v562_v8 = vmul.f32 %v412_v48, %v412_v48 }
  0xef   : > { %v517_v60 = vadd.f32 %v516_v57, %v402_v32  ;;  %v588_v0 = vadd.f32 %v557_v59, %v556_v58  ;;  %v563_v11 = vmul.f32 %v414_v52, %v414_v52  ;;  %v564_v14 = vmul.f32 %v960_v25, %v960_v25 }
  0xf0   : > { %v565_v17 = vmul.f32 %v974_v29, %v974_v29  ;;  %v566_v20 = vmul.f32 %v988_v33, %v988_v33  ;;  %v567_v23 = vmul.f32 %v1001_v37, %v1001_v37  ;;  %v568_v28 = vmul.f32 %v1014_v41, %v1014_v41 }
  0xf1   : > { %v518_v62 = vadd.f32 %v517_v60, %v404_v36  ;;  %v589_v3 = vadd.f32 %v588_v0, %v558_v61  ;;  %v569_v36 = vmul.f32 %v1027_v45, %v1027_v45  ;;  %v571_v56 = vmul.f32 %v434_v53, %v434_v53 }
  0xf2   : > { %v572_v58 = vmul.f32 %v966_v26, %v966_v26  ;;  %v573_v60 = vmul.f32 %v982_v30, %v982_v30 }
  0xf3   : > { %v519_v1 = vadd.f32 %v518_v62, %v407_v40  ;;  %v590_v6 = vadd.f32 %v589_v3, %v559_v63  ;;  %v575_v63 = vmul.f32 %v1008_v38, %v1008_v38  ;;  %v577_v3 = vmul.f32 %v1034_v46, %v1034_v46 }
  0xf5   : > { %v520_v4 = vadd.f32 %v519_v1, %v409_v44  ;;  %v591_v9 = vadd.f32 %v590_v6, %v560_v2  ;;  %v570_v44 = vmul.f32 %v432_v49, %v432_v49  ;;  %v576_v1 = vmul.f32 %v1021_v42, %v1021_v42 }
  0xf7   : > { %v521_v7 = vadd.f32 %v520_v4, %v412_v48  ;;  %v592_v12 = vadd.f32 %v591_v9, %v561_v5  ;;  %v578_v5 = vmul.f32 %v1044_v50, %v1044_v50  ;;  %v580_v9 = vmul.f32 %v968_v27, %v968_v27 }
  0xf9   : > { %v522_v10 = vadd.f32 %v521_v7, %v414_v52  ;;  %v593_v15 = vadd.f32 %v592_v12, %v562_v8  ;;  %v579_v7 = vmul.f32 %v1054_v54, %v1054_v54 }
  0xfb   : > { %v523_v13 = vadd.f32 %v522_v10, %v960_v25  ;;  %v594_v18 = vadd.f32 %v593_v15, %v563_v11  ;;  %v581_v11 = vmul.f32 %v984_v31, %v984_v31  ;;  %v583_v15 = vmul.f32 %v1010_v39, %v1010_v39 }
  0xfd   : > { %v524_v16 = vadd.f32 %v523_v13, %v974_v29  ;;  %v595_v21 = vadd.f32 %v594_v18, %v564_v14  ;;  %v582_v13 = vmul.f32 %v997_v35, %v997_v35 }
  0xff   : > { %v525_v19 = vadd.f32 %v524_v16, %v988_v33  ;;  %v596_v24 = vadd.f32 %v595_v21, %v565_v17  ;;  %v584_v17 = vmul.f32 %v1023_v43, %v1023_v43  ;;  %v586_v21 = vmul.f32 %v1046_v51, %v1046_v51 }
 0x101   : > { %v526_v22 = vadd.f32 %v525_v19, %v1001_v37  ;;  %v597_v32 = vadd.f32 %v596_v24, %v566_v20  ;;  %v585_v19 = vmul.f32 %v1036_v47, %v1036_v47 }
 0x103   : > { %v527_v25 = vadd.f32 %v526_v22, %v1014_v41  ;;  %v598_v40 = vadd.f32 %v597_v32, %v567_v23  ;;  %v587_v23 = vmul.f32 %v1056_v55, %v1056_v55 }
 0x105   : > { %v528_v29 = vadd.f32 %v527_v25, %v1027_v45  ;;  %v599_v48 = vadd.f32 %v598_v40, %v568_v28 }
 0x107   : > { %v529_v33 = vadd.f32 %v528_v29, %v432_v49  ;;  %v600_v57 = vadd.f32 %v599_v48, %v569_v36  ;;  %v574_v49 = vmul.f32 %v995_v34, %v995_v34 }
 0x109   : > { %v530_v52 = vadd.f32 %v529_v33, %v434_v53  ;;  %v601_v59 = vadd.f32 %v600_v57, %v570_v44 }
 0x10b   : > { %v531_v37 = vadd.f32 %v530_v52, %v966_v26  ;;  %v602_v61 = vadd.f32 %v601_v59, %v571_v56 }
 0x10d   : > { %v532_v41 = vadd.f32 %v531_v37, %v982_v30  ;;  %v603_v62 = vadd.f32 %v602_v61, %v572_v58 }
 0x10f   : > { %v533_v45 = vadd.f32 %v532_v41, %v995_v34  ;;  %v604_v0 = vadd.f32 %v603_v62, %v573_v60 }
 0x111   : > { %v534_v53 = vadd.f32 %v533_v45, %v1008_v38  ;;  %v605_v2 = vadd.f32 %v604_v0, %v574_v49 }
 0x113   : > { %v535_v26 = vadd.f32 %v534_v53, %v1021_v42  ;;  %v606_v4 = vadd.f32 %v605_v2, %v575_v63 }
 0x115   : > { %v536_v30 = vadd.f32 %v535_v26, %v1034_v46  ;;  %v607_v6 = vadd.f32 %v606_v4, %v576_v1 }
 0x117   : > { %v537_v34 = vadd.f32 %v536_v30, %v1044_v50  ;;  %v608_v8 = vadd.f32 %v607_v6, %v577_v3 }
 0x119   : > { %v538_v38 = vadd.f32 %v537_v34, %v1054_v54  ;;  %v609_v10 = vadd.f32 %v608_v8, %v578_v5 }
 0x11b   : > { %v539_v42 = vadd.f32 %v538_v38, %v968_v27  ;;  %v610_v12 = vadd.f32 %v609_v10, %v579_v7 }
 0x11d   : > { %v540_v46 = vadd.f32 %v539_v42, %v984_v31  ;;  %v611_v14 = vadd.f32 %v610_v12, %v580_v9 }
 0x11f   : > { %v541_v50 = vadd.f32 %v540_v46, %v997_v35  ;;  %v612_v16 = vadd.f32 %v611_v14, %v581_v11 }
 0x121   : > { %v542_v54 = vadd.f32 %v541_v50, %v1010_v39  ;;  %v613_v18 = vadd.f32 %v612_v16, %v582_v13 }
 0x123   : > { %v543_v27 = vadd.f32 %v542_v54, %v1023_v43  ;;  %v614_v20 = vadd.f32 %v613_v18, %v583_v15 }
 0x125   : > { %v544_v31 = vadd.f32 %v543_v27, %v1036_v47  ;;  %v615_v22 = vadd.f32 %v614_v20, %v584_v17 }
 0x127   : > { %v545_v35 = vadd.f32 %v544_v31, %v1046_v51  ;;  %v616_v24 = vadd.f32 %v615_v22, %v585_v19  ;;  %v515_v51 = vld [vmem:[%s1160_s3] sm:$0x1] }
 0x129   : > { %v546_v39 = vadd.f32 %v545_v35, %v1056_v55  ;;  %v617_v25 = vadd.f32 %v616_v24, %v586_v21  ;;  %v555_v55 = vld [vmem:[%s1161_s4] sm:$0x1] }
 0x12b   : > { %v547_v43 = vrot.slane %v546_v39, 4  ;;  %v618_v32 = vadd.f32 %v617_v25, %v587_v23 }
 0x12d   : > { %v548_v28 = vadd.f32 %v547_v43, %v546_v39  ;;  %v619_v36 = vrot.slane %v618_v32, 4 }
 0x12f   : > { %v549_v29 = vrot.slane %v548_v28, 2  ;;  %v620_v40 = vadd.f32 %v619_v36, %v618_v32 }
 0x131   : > { %v550_v47 = vadd.f32 %v549_v29, %v548_v28  ;;  %v621_v44 = vrot.slane %v620_v40, 2 }
 0x133   : > { %v551_v33 = vrot.slane %v550_v47, 1  ;;  %v622_v52 = vadd.f32 %v621_v44, %v620_v40 }
 0x135   : > { %v552_v48 = vadd.f32 %v551_v33, %v550_v47  ;;  %v623_v57 = vrot.slane %v622_v52, 1 }
 0x137   : > { %v553_v56 = vadd.f32 %v552_v48, %v515_v51  ;;  %v624_v37 = vadd.f32 %v623_v57, %v622_v52 }
 0x139   : > { %554 = vst [vmem:[%s1160_s3] sm:$0x1] %v553_v56  ;;  %v625_v58 = vadd.f32 %v624_v37, %v555_v55 }
 0x13b   : > { %626 = vst [vmem:[%s1161_s4] sm:$0x1] %v625_v58 }
 0x13c PF: > { %s15_s15 = sadd.s32 1, %s866_s15  }
 0x13d   : > { %p12_p5 = scmp.ge.s32.totalorder %s15_s15, 4  }
 0x13f   :  { %14 = sbr.rel (!%p12_p5) target bundleno = 1 (0x1), region = 78 }

// kernel: double_conv.7
= control target key start
LH: loop header
LB: loop body
LE: loop exit
PB: predicated region body
PF: predicated region fallthrough
CT: control target
= control target key end

     0   :  { %s532_s18 = smov 0   ;;  %s704_s0 = inlined_call_operand.vmem [shape: f32[512,128], index: 0, kind: input, shape index: {}]   ;;  %s705_s1 = inlined_call_operand.vmem [shape: f32[1,128], index: 1, kind: input, shape index: {}]   ;;  %s706_s2 = inlined_call_operand.vmem [shape: f32[1,128], index: 2, kind: input, shape index: {}]   ;;  %s707_s3 = inlined_call_operand.vmem [shape: f32[1,128], index: 3, kind: input, shape index: {}]   ;;  %s708_s4 = inlined_call_operand.vmem [shape: f32[1,128], index: 4, kind: input, shape index: {}]   ;;  %s709_s5 = inlined_call_operand.vmem [shape: f32[512,128], index: 5, kind: output, shape index: {}]  }
   0x1 LB: > { %s473_s19 = sadd.s32 4294967295, %s500_s18   ;;  %p477_p0 = scmp.ge.s32.totalorder %s500_s18, 1  ;;  %s500_s18 = sphi %s532_s18, %s15_s18  }
   0x2   : > { %p188_p1 = scmp.lt.s32.totalorder %s500_s18, 3 }
   0x4   : > { %p189_p2 = pnand %p477_p0, %p188_p1 }
   0x5   : > { %s478_s24 = sshll.u32 (!%p189_p2), %s473_s19, 5 }
   0x6   : > { %192 = sbr.rel (%p189_p2) target bundleno = 84 (0x54), region = 40  ;;  %p217_p3 = scmp.lt.s32.totalorder (!%p189_p2), %s478_s24, 63 }
   0xb   : > { %v228_v0 = vld [vmem:[%s705_s1] sm:$0x1]  ;;  %s711_s24 = smov (!%p217_p3, %s478_s24), 63 }
   0xc   : > { %v230_v1 = vld [vmem:[%s706_s2] sm:$0x1]  ;;  %v229_v2 = vmul.f32 0.001953125, %v228_v0  ;;  %s479_s25 = sshll.u32 %s711_s24, 3 }
   0xd   : > { %v231_v3 = vmul.f32 0.001953125, %v230_v1  ;;  %v235_v13 = vld [vmem:[%s707_s3] sm:$0x1]  ;;  %s557_s30 = scalar_lea.vmem %s704_s0, %s479_s25  ;;  %s596_s10 = scalar_lea.vmem %s709_s5, %s479_s25 }
   0xe   : > { %v232_v4 = vmul.f32 %v229_v2, %v229_v2  ;;  %v248_v17 = vld [vmem:[%s708_s4] sm:$0x1]  ;;  %v252_v19 = vld [vmem:[%s557_s30 + $0x8] sm:$0xff]  ;;  %v253_v20 = vld [vmem:[%s557_s30 + $0x10] sm:$0xff] }
   0xf   : > { %v251_v18 = vld [vmem:[%s557_s30] sm:$0xff]  ;;  %v254_v23 = vld [vmem:[%s557_s30 + $0x18] sm:$0xff]  ;;  %v256_v25 = vld [vmem:[%s557_s30 + $0x28] sm:$0xff] }
  0x10   : > { %v233_v5 = vsub.f32 %v231_v3, %v232_v4  ;;  %v255_v24 = vld [vmem:[%s557_s30 + $0x20] sm:$0xff]  ;;  %v257_v26 = vld [vmem:[%s557_s30 + $0x30] sm:$0xff]  ;;  %v258_v31 = vld [vmem:[%s557_s30 + $0x38] sm:$0xff] }
  0x11   : > { %v259_v32 = vld [vmem:[%s557_s30 + $0x40] sm:$0xff]  ;;  %v260_v38 = vld [vmem:[%s557_s30 + $0x48] sm:$0xff]  ;;  %v261_v39 = vld [vmem:[%s557_s30 + $0x50] sm:$0xff] }
  0x12   : > { %v234_v6 = vmax.f32 %v233_v5, 0.0  ;;  %v262_v46 = vld [vmem:[%s557_s30 + $0x58] sm:$0xff]  ;;  %v263_v51 = vld [vmem:[%s557_s30 + $0x60] sm:$0xff]  ;;  %v264_v56 = vld [vmem:[%s557_s30 + $0x68] sm:$0xff] }
  0x13   : > { %v265_v60 = vld [vmem:[%s557_s30 + $0x70] sm:$0xff]  ;;  %v266_v0 = vld [vmem:[%s557_s30 + $0x78] sm:$0xff]  ;;  %v267_v4 = vld [vmem:[%s557_s30 + $0x80] sm:$0xff] }
  0x14   : > { %v236_v7 = vadd.f32 1e-05, %v234_v6 }
  0x16   : > { %492 = vrsqrt.f32 %v236_v7  ;;  %vm243_vm0 = vweird.f32 %v236_v7 }
  0x1c   : > { %v493_v8 = vpop.eup %492 }
  0x1d   : > { %v238_v9 = vmul.f32 %v493_v8, %v236_v7  ;;  %vm244_vm1 = vweird.f32 %v493_v8 }
  0x1e   : > { %vm245_vm2 = vmor %vm243_vm0, %vm244_vm1 }
  0x1f   : > { %v239_v10 = vmul.f32 %v493_v8, %v238_v9 }
  0x21   : > { %v240_v11 = vmul.f32 0.5, %v239_v10 }
  0x23   : > { %v241_v12 = vsub.f32 1.5, %v240_v11 }
  0x25   : > { %v242_v14 = vmul.f32 %v493_v8, %v241_v12  ;;  %v269_v12 = vld [vmem:[%s557_s30 + $0x90] sm:$0xff] }
  0x27   : > { %v246_v15 = vsel %vm245_vm2, %v493_v8, %v242_v14  ;;  %v268_v8 = vld [vmem:[%s557_s30 + $0x88] sm:$0xff] }
  0x28   : > { %v247_v16 = vmul.f32 %v246_v15, %v235_v13 }
  0x2a   : > { %v249_v21 = vmul.f32 %v247_v16, %v229_v2  ;;  %v565_v22 = vperm.slane %v247_v16, 0  ;;  %v270_v16 = vld [vmem:[%s557_s30 + $0x98] sm:$0xff] }
  0x2c   : > { %v250_v27 = vsub.f32 %v248_v17, %v249_v21  ;;  %v286_v28 = vmul.f32 %v565_v22, %v251_v18  ;;  %v287_v29 = vmul.f32 %v565_v22, %v252_v19  ;;  %v288_v30 = vmul.f32 %v565_v22, %v253_v20  ;;  %v271_v20 = vld [vmem:[%s557_s30 + $0xa0] sm:$0xff] }
  0x2d   : > { %v289_v33 = vmul.f32 %v565_v22, %v254_v23  ;;  %v290_v34 = vmul.f32 %v565_v22, %v255_v24  ;;  %v291_v35 = vmul.f32 %v565_v22, %v256_v25  ;;  %v292_v37 = vmul.f32 %v565_v22, %v257_v26  ;;  %v272_v25 = vld [vmem:[%s557_s30 + $0xa8] sm:$0xff] }
  0x2e   : > { %v579_v36 = vperm.slane %v250_v27, 0  ;;  %v293_v40 = vmul.f32 %v565_v22, %v258_v31  ;;  %v294_v41 = vmul.f32 %v565_v22, %v259_v32  ;;  %v295_v49 = vmul.f32 %v565_v22, %v260_v38  ;;  %v275_v38 = vld [vmem:[%s557_s30 + $0xc0] sm:$0xff] }
  0x2f   : > { %v296_v50 = vmul.f32 %v565_v22, %v261_v39  ;;  %v297_v59 = vmul.f32 %v565_v22, %v262_v46  ;;  %v298_v63 = vmul.f32 %v565_v22, %v263_v51  ;;  %v299_v3 = vmul.f32 %v565_v22, %v264_v56  ;;  %v277_v46 = vld [vmem:[%s557_s30 + $0xd0] sm:$0xff] }
  0x30   : > { %v321_v42 = vadd.f32 %v579_v36, %v286_v28  ;;  %v322_v43 = vadd.f32 %v579_v36, %v287_v29  ;;  %v323_v44 = vadd.f32 %v579_v36, %v288_v30  ;;  %v324_v45 = vadd.f32 %v579_v36, %v289_v33  ;;  %v273_v29 = vld [vmem:[%s557_s30 + $0xb0] sm:$0xff]  ;;  %v274_v33 = vld [vmem:[%s557_s30 + $0xb8] sm:$0xff] }
  0x31   : > { %v325_v47 = vadd.f32 %v579_v36, %v290_v34  ;;  %v326_v48 = vadd.f32 %v579_v36, %v291_v35  ;;  %v327_v55 = vadd.f32 %v579_v36, %v292_v37  ;;  %v328_v58 = vadd.f32 %v579_v36, %v293_v40 }
  0x32   : > { %v353_v52 = vmax.f32 %v321_v42, 0.0  ;;  %v354_v53 = vmax.f32 %v322_v43, 0.0  ;;  %v355_v54 = vmax.f32 %v323_v44, 0.0  ;;  %v356_v57 = vmax.f32 %v324_v45, 0.0  ;;  %v276_v42 = vld [vmem:[%s557_s30 + $0xc8] sm:$0xff] }
  0x33   : > { %v357_v61 = vmax.f32 %v325_v47, 0.0  ;;  %v329_v62 = vadd.f32 %v579_v36, %v294_v41  ;;  %v358_v1 = vmax.f32 %v326_v48, 0.0  ;;  %v330_v2 = vadd.f32 %v579_v36, %v295_v49 }
  0x34   : > { %385 = vst [vmem:[%s596_s10] sm:$0xff] %v353_v52  ;;  %v359_v5 = vmax.f32 %v327_v55, 0.0  ;;  %v331_v6 = vadd.f32 %v579_v36, %v296_v50  ;;  %v300_v7 = vmul.f32 %v565_v22, %v265_v60  ;;  %v360_v9 = vmax.f32 %v328_v58, 0.0  ;;  %v278_v50 = vld [vmem:[%s557_s30 + $0xd8] sm:$0xff]  ;;  %v280_v58 = vld [vmem:[%s557_s30 + $0xe8] sm:$0xff] }
  0x35   : > { %386 = vst [vmem:[%s596_s10 + $0x8] sm:$0xff] %v354_v53  ;;  %v332_v10 = vadd.f32 %v579_v36, %v297_v59  ;;  %v301_v11 = vmul.f32 %v565_v22, %v266_v0  ;;  %v361_v13 = vmax.f32 %v329_v62, 0.0  ;;  %v333_v14 = vadd.f32 %v579_v36, %v298_v63  ;;  %v281_v62 = vld [vmem:[%s557_s30 + $0xf0] sm:$0xff] }
  0x36   : > { %387 = vst [vmem:[%s596_s10 + $0x10] sm:$0xff] %v355_v54  ;;  %v302_v15 = vmul.f32 %v565_v22, %v267_v4  ;;  %v362_v17 = vmax.f32 %v330_v2, 0.0  ;;  %v334_v18 = vadd.f32 %v579_v36, %v299_v3  ;;  %v303_v19 = vmul.f32 %v565_v22, %v268_v8  ;;  %v279_v54 = vld [vmem:[%s557_s30 + $0xe0] sm:$0xff]  ;;  %v282_v2 = vld [vmem:[%s557_s30 + $0xf8] sm:$0xff] }
  0x37   : > { %388 = vst [vmem:[%s596_s10 + $0x18] sm:$0xff] %v356_v57  ;;  %v363_v21 = vmax.f32 %v331_v6, 0.0  ;;  %v335_v23 = vadd.f32 %v579_v36, %v300_v7  ;;  %v304_v24 = vmul.f32 %v565_v22, %v269_v12  ;;  %v364_v26 = vmax.f32 %v332_v10, 0.0 }
  0x38   : > { %389 = vst [vmem:[%s596_s10 + $0x20] sm:$0xff] %v357_v61  ;;  %v336_v27 = vadd.f32 %v579_v36, %v301_v11  ;;  %v305_v28 = vmul.f32 %v565_v22, %v270_v16  ;;  %v365_v30 = vmax.f32 %v333_v14, 0.0  ;;  %v337_v31 = vadd.f32 %v579_v36, %v302_v15 }
  0x39   : > { %390 = vst [vmem:[%s596_s10 + $0x28] sm:$0xff] %v358_v1  ;;  %v306_v32 = vmul.f32 %v565_v22, %v271_v20  ;;  %v366_v34 = vmax.f32 %v334_v18, 0.0  ;;  %v338_v35 = vadd.f32 %v579_v36, %v303_v19  ;;  %v307_v37 = vmul.f32 %v565_v22, %v272_v25 }
  0x3a   : > { %391 = vst [vmem:[%s596_s10 + $0x30] sm:$0xff] %v359_v5  ;;  %v367_v39 = vmax.f32 %v335_v23, 0.0  ;;  %v339_v40 = vadd.f32 %v579_v36, %v304_v24  ;;  %v308_v41 = vmul.f32 %v565_v22, %v273_v29  ;;  %v368_v43 = vmax.f32 %v336_v27, 0.0 }
  0x3b   : > { %392 = vst [vmem:[%s596_s10 + $0x38] sm:$0xff] %v360_v9  ;;  %v340_v44 = vadd.f32 %v579_v36, %v305_v28  ;;  %v309_v45 = vmul.f32 %v565_v22, %v274_v33  ;;  %v369_v47 = vmax.f32 %v337_v31, 0.0  ;;  %v341_v48 = vadd.f32 %v579_v36, %v306_v32 }
  0x3c   : > { %393 = vst [vmem:[%s596_s10 + $0x40] sm:$0xff] %v361_v13  ;;  %v310_v49 = vmul.f32 %v565_v22, %v275_v38  ;;  %v370_v51 = vmax.f32 %v338_v35, 0.0  ;;  %v342_v52 = vadd.f32 %v579_v36, %v307_v37  ;;  %v311_v53 = vmul.f32 %v565_v22, %v276_v42 }
  0x3d   : > { %394 = vst [vmem:[%s596_s10 + $0x48] sm:$0xff] %v362_v17  ;;  %v371_v55 = vmax.f32 %v339_v40, 0.0  ;;  %v343_v56 = vadd.f32 %v579_v36, %v308_v41  ;;  %v312_v57 = vmul.f32 %v565_v22, %v277_v46  ;;  %v372_v59 = vmax.f32 %v340_v44, 0.0 }
  0x3e   : > { %395 = vst [vmem:[%s596_s10 + $0x50] sm:$0xff] %v363_v21  ;;  %v344_v60 = vadd.f32 %v579_v36, %v309_v45  ;;  %v313_v61 = vmul.f32 %v565_v22, %v278_v50  ;;  %v373_v63 = vmax.f32 %v341_v48, 0.0  ;;  %v345_v0 = vadd.f32 %v579_v36, %v310_v49 }
  0x3f   : > { %396 = vst [vmem:[%s596_s10 + $0x58] sm:$0xff] %v364_v26  ;;  %v314_v1 = vmul.f32 %v565_v22, %v279_v54  ;;  %v374_v3 = vmax.f32 %v342_v52, 0.0  ;;  %v346_v4 = vadd.f32 %v579_v36, %v311_v53  ;;  %v315_v5 = vmul.f32 %v565_v22, %v280_v58 }
  0x40   : > { %397 = vst [vmem:[%s596_s10 + $0x60] sm:$0xff] %v365_v30  ;;  %v375_v6 = vmax.f32 %v343_v56, 0.0  ;;  %v347_v7 = vadd.f32 %v579_v36, %v312_v57  ;;  %v316_v8 = vmul.f32 %v565_v22, %v281_v62  ;;  %v376_v9 = vmax.f32 %v344_v60, 0.0 }
  0x41   : > { %398 = vst [vmem:[%s596_s10 + $0x68] sm:$0xff] %v366_v34  ;;  %v348_v10 = vadd.f32 %v579_v36, %v313_v61  ;;  %v317_v11 = vmul.f32 %v565_v22, %v282_v2  ;;  %v377_v12 = vmax.f32 %v345_v0, 0.0  ;;  %v349_v13 = vadd.f32 %v579_v36, %v314_v1 }
  0x42   : > { %399 = vst [vmem:[%s596_s10 + $0x70] sm:$0xff] %v367_v39  ;;  %v378_v14 = vmax.f32 %v346_v4, 0.0  ;;  %v350_v15 = vadd.f32 %v579_v36, %v315_v5  ;;  %v379_v16 = vmax.f32 %v347_v7, 0.0  ;;  %v351_v17 = vadd.f32 %v579_v36, %v316_v8 }
  0x43   : > { %400 = vst [vmem:[%s596_s10 + $0x78] sm:$0xff] %v368_v43  ;;  %v380_v22 = vmax.f32 %v348_v10, 0.0  ;;  %v352_v18 = vadd.f32 %v579_v36, %v317_v11  ;;  %v381_v19 = vmax.f32 %v349_v13, 0.0 }
  0x44   : > { %401 = vst [vmem:[%s596_s10 + $0x80] sm:$0xff] %v369_v47  ;;  %v382_v20 = vmax.f32 %v350_v15, 0.0  ;;  %v383_v21 = vmax.f32 %v351_v17, 0.0 }
  0x45   : > { %402 = vst [vmem:[%s596_s10 + $0x88] sm:$0xff] %v370_v51  ;;  %v384_v23 = vmax.f32 %v352_v18, 0.0 }
  0x46   : > { %403 = vst [vmem:[%s596_s10 + $0x90] sm:$0xff] %v371_v55 }
  0x47   : > { %404 = vst [vmem:[%s596_s10 + $0x98] sm:$0xff] %v372_v59 }
  0x48   : > { %405 = vst [vmem:[%s596_s10 + $0xa0] sm:$0xff] %v373_v63 }
  0x49   : > { %406 = vst [vmem:[%s596_s10 + $0xa8] sm:$0xff] %v374_v3 }
  0x4a   : > { %407 = vst [vmem:[%s596_s10 + $0xb0] sm:$0xff] %v375_v6 }
  0x4b   : > { %408 = vst [vmem:[%s596_s10 + $0xb8] sm:$0xff] %v376_v9 }
  0x4c   : > { %409 = vst [vmem:[%s596_s10 + $0xc0] sm:$0xff] %v377_v12 }
  0x4d   : > { %410 = vst [vmem:[%s596_s10 + $0xc8] sm:$0xff] %v378_v14 }
  0x4e   : > { %411 = vst [vmem:[%s596_s10 + $0xd0] sm:$0xff] %v379_v16 }
  0x4f   : > { %412 = vst [vmem:[%s596_s10 + $0xd8] sm:$0xff] %v380_v22 }
  0x50   : > { %413 = vst [vmem:[%s596_s10 + $0xe0] sm:$0xff] %v381_v19 }
  0x51   : > { %414 = vst [vmem:[%s596_s10 + $0xe8] sm:$0xff] %v382_v20 }
  0x52   : > { %415 = vst [vmem:[%s596_s10 + $0xf0] sm:$0xff] %v383_v21 }
  0x53   : > { %416 = vst [vmem:[%s596_s10 + $0xf8] sm:$0xff] %v384_v23 }
  0x54 PF: > { %s15_s18 = sadd.s32 1, %s500_s18  }
  0x55   : > { %p12_p4 = scmp.ge.s32.totalorder %s15_s18, 4  }
  0x57   :  { %14 = sbr.rel (!%p12_p4) target bundleno = 1 (0x1), region = 70 }

</bundles_post_ra>
